<compile_context>
chip_gen: v5e
topology: v5e:2x2
jax: 0.10.0
libtpu: 0.0.40
codegen_flags: <defaults>
</compile_context>

<pallas_src>
import functools

import jax
import jax.numpy as jnp
from jax import lax
from jax.experimental import pallas as pl
from jax.experimental.pallas import tpu as pltpu


# ----------------------------------------------------------------------------- utils
def _mm_t(a, b):
    """a @ b.T with f32 accumulation (torch.nn.Linear convention, no transpose op)."""
    return lax.dot_general(a, b, (((1,), (1,)), ((), ())),
                           preferred_element_type=jnp.float32)


def _pick_tile(n, pref, align):
    """Largest divisor of n that is a multiple of `align` and <= pref; else n (full)."""
    if n % align == 0:
        t = min(n, max(align, (pref // align) * align))
        while t >= align:
            if n % t == 0:
                return t
            t -= align
    return n


# ------------------------------------------------------------------- kernel A: encoder
def _encoder_kernel(x_ref, adj_ref, w_stru_ref, b_stru_ref, w_gat_ref,
                    att_src_ref, att_dst_ref, b_gat_ref,
                    w_a1_ref, b_a1_ref, w_a2_ref, b_a2_ref,
                    emb_ref, attr_ref):
    x = x_ref[...]
    adj = adj_ref[...]
    n = adj.shape[0]

    # --- structure encoder: h = ReLU(x @ W_stru^T + b_stru) ---
    h = jnp.maximum(_mm_t(x, w_stru_ref[...]) + b_stru_ref[...], 0.0)

    # --- GATConv(n_h -> n_in), heads=1, dropout=0, add_self_loops=True ---
    z = _mm_t(h, w_gat_ref[...])                                    # (N, F)  lin (no bias)
    a_src = _mm_t(z, att_src_ref[...])                              # (N, 1)
    a_dst = lax.dot_general(att_dst_ref[...], z, (((1,), (1,)), ((), ())),
                            preferred_element_type=jnp.float32)     # (1, N)
    e = a_src + a_dst                                               # e[i, j]: edge i -> j
    e = jnp.where(e >= 0.0, e, 0.2 * e)                             # LeakyReLU(0.2)

    rows = lax.broadcasted_iota(jnp.int32, (n, n), 0)
    cols = lax.broadcasted_iota(jnp.int32, (n, n), 1)
    mask = jnp.logical_or(adj > 0.0, rows == cols)                  # edges + self loops

    e_m = jnp.where(mask, e, -1e30)
    m = jnp.max(e_m, axis=0, keepdims=True)                         # per destination col
    w = jnp.exp(e_m - m)                                            # masked entries -> 0
    attn = w / (jnp.sum(w, axis=0, keepdims=True) + 1e-16)          # softmax over sources
    emb = lax.dot_general(attn, z, (((0,), (0,)), ((), ())),        # attn^T @ z
                          preferred_element_type=jnp.float32) + b_gat_ref[...]
    emb_ref[...] = emb

    # --- attribute decoder + per-node attribute reconstruction error ---
    x1 = jnp.maximum(_mm_t(x, w_a1_ref[...]) + b_a1_ref[...], 0.0)
    x_hat = _mm_t(x1, w_a2_ref[...]) + b_a2_ref[...]
    d = x - x_hat
    attr_ref[...] = jnp.sqrt(jnp.sum(d * d, axis=1, keepdims=True))


def _encoder_call(x, adj, p):
    n, f_in = x.shape
    args = (
        x, adj,
        p["w_stru"], p["b_stru"].reshape(1, -1),
        p["w_gat"], p["att_src"].reshape(1, -1), p["att_dst"].reshape(1, -1),
        p["b_gat"].reshape(1, -1),
        p["w_a1"], p["b_a1"].reshape(1, -1),
        p["w_a2"], p["b_a2"].reshape(1, -1),
    )
    return pl.pallas_call(
        _encoder_kernel,
        out_shape=(jax.ShapeDtypeStruct((n, f_in), jnp.float32),
                   jax.ShapeDtypeStruct((n, 1), jnp.float32)),
        in_specs=[pl.BlockSpec(memory_space=pltpu.MemorySpace.VMEM)] * len(args),
        out_specs=(pl.BlockSpec(memory_space=pltpu.MemorySpace.VMEM),
                   pl.BlockSpec(memory_space=pltpu.MemorySpace.VMEM)),
        compiler_params=pltpu.CompilerParams(vmem_limit_bytes=32 * 1024 * 1024),
    )(*args)


# --------------------------------------------------------- kernel B: structure error
def _stru_err_kernel(adj_ref, emb_r_ref, emb_c_ref, out_ref):
    k = pl.program_id(1)

    @pl.when(k == 0)
    def _():
        out_ref[...] = jnp.zeros_like(out_ref)

    s = lax.dot_general(emb_r_ref[...], emb_c_ref[...], (((1,), (1,)), ((), ())),
                        preferred_element_type=jnp.float32)
    s = 1.0 / (1.0 + jnp.exp(-s))                 # sigmoid(emb_i . emb_j)
    d = adj_ref[...] - s
    out_ref[...] += jnp.sum(d * d, axis=1, keepdims=True)

    @pl.when(k == pl.num_programs(1) - 1)
    def _():
        out_ref[...] = jnp.sqrt(out_ref[...])


def _stru_err_call(adj, emb, tile_n=None, tile_m=None):
    n, f = emb.shape
    tn = tile_n if tile_n is not None else _pick_tile(n, 256, 8)
    tm = tile_m if tile_m is not None else _pick_tile(n, 512, 128)
    assert n % tn == 0 and n % tm == 0, "tiles must divide N"
    grid = (n // tn, n // tm)
    return pl.pallas_call(
        _stru_err_kernel,
        out_shape=jax.ShapeDtypeStruct((n, 1), jnp.float32),
        grid_spec=pltpu.PrefetchScalarGridSpec(
            num_scalar_prefetch=0,
            grid=grid,
            in_specs=[
                pl.BlockSpec((tn, tm), lambda i, k: (i, k)),   # adj tile
                pl.BlockSpec((tn, f), lambda i, k: (i, 0)),    # emb rows
                pl.BlockSpec((tm, f), lambda i, k: (k, 0)),    # emb cols
            ],
            out_specs=pl.BlockSpec((tn, 1), lambda i, k: (i, 0)),  # resident accumulator
        ),
        compiler_params=pltpu.CompilerParams(
            dimension_semantics=("parallel", "arbitrary"),
            vmem_limit_bytes=32 * 1024 * 1024,
        ),
    )(adj, emb, emb)


# -------------------------------------------------------------------------- forward
@functools.partial(jax.jit, static_argnames=("tile_n", "tile_m"))
def anomalydae_forward(seq1, adj, params, *, tile_n=None, tile_m=None):
    x = jnp.asarray(seq1, jnp.float32)
    a = jnp.asarray(adj, jnp.float32)
    x = x.reshape(x.shape[-2], x.shape[-1])   # torch.squeeze of (1, N, F)
    a = a.reshape(a.shape[-2], a.shape[-1])   # torch.squeeze of (1, N, N)

    emb, attr_err = _encoder_call(x, a, params)
    stru_err = _stru_err_call(a, emb, tile_n, tile_m)

    score = 0.5 * attr_err[:, 0] + 0.5 * stru_err[:, 0]   # weight alpha = 0.5
    loss = jnp.mean(score)
    return loss, score


# ----------------------------------------------------------------- pure-JAX reference
def _forward_reference(x, adj, p):
    n = x.shape[0]
    h = jnp.maximum(x @ p["w_stru"].T + p["b_stru"], 0.0)
    z = h @ p["w_gat"].T
    a_src = z @ p["att_src"]
    a_dst = z @ p["att_dst"]
    e = a_src[:, None] + a_dst[None, :]
    e = jnp.where(e >= 0.0, e, 0.2 * e)
    mask = jnp.logical_or(adj > 0.0, jnp.eye(n, dtype=bool))
    e_m = jnp.where(mask, e, -1e30)
    m = jnp.max(e_m, axis=0, keepdims=True)
    w = jnp.exp(e_m - m)
    attn = w / (jnp.sum(w, axis=0, keepdims=True) + 1e-16)
    emb = attn.T @ z + p["b_gat"]
    s_ = 1.0 / (1.0 + jnp.exp(-(emb @ emb.T)))
    x1 = jnp.maximum(x @ p["w_a1"].T + p["b_a1"], 0.0)
    x_hat = x1 @ p["w_a2"].T + p["b_a2"]
    attr_err = jnp.sqrt(jnp.sum((x - x_hat) ** 2, axis=1))
    stru_err = jnp.sqrt(jnp.sum((adj - s_) ** 2, axis=1))
    score = 0.5 * attr_err + 0.5 * stru_err
    return jnp.mean(score), score


# --------------------------------------------------------------------------- helpers
def make_params(key, n_in, n_h, scale=0.2):
    ks = jax.random.split(key, 8)
    return {
        "w_stru": jax.random.normal(ks[0], (n_h, n_in), jnp.float32) * scale,
        "b_stru": jnp.zeros((n_h,), jnp.float32),
        "w_gat": jax.random.normal(ks[1], (n_in, n_h), jnp.float32) * scale,
        "att_src": jax.random.normal(ks[2], (n_in,), jnp.float32) * scale,
        "att_dst": jax.random.normal(ks[3], (n_in,), jnp.float32) * scale,
        "b_gat": jnp.zeros((n_in,), jnp.float32),
        "w_a1": jax.random.normal(ks[4], (n_h, n_in), jnp.float32) * scale,
        "b_a1": jax.random.normal(ks[5], (n_h,), jnp.float32) * 0.05,
        "w_a2": jax.random.normal(ks[6], (n_in, n_h), jnp.float32) * scale,
        "b_a2": jax.random.normal(ks[7], (n_in,), jnp.float32) * 0.05,
    }


def make_adj(key, n, p=0.3):
    u = jax.random.uniform(key, (n, n))
    a = (u < p).astype(jnp.float32)
    a = jnp.maximum(a, a.T)
    a = a * (1.0 - jnp.eye(n, dtype=jnp.float32))
    return a


# ------------------------------------------------------------------------------ main
if __name__ == "__main__":
    key = jax.random.PRNGKey(0)
    k_feat, k_adj, k_par, k2_feat, k2_adj, k2_par = jax.random.split(key, 6)

    # Case 1: small, module-consistent shapes (leading batch dim of 1, like the torch code).
    N, F_IN, N_H = 16, 32, 32
    seq1 = jax.random.normal(k_feat, (1, N, F_IN), jnp.float32)
    adj = make_adj(k_adj, N)[None]
    params = make_params(k_par, F_IN, N_H)

    loss, score = jax.block_until_ready(anomalydae_forward(seq1, adj, params))
    loss_ref, score_ref = _forward_reference(seq1[0], adj[0], params)
    assert score.shape == (N,)
    assert jnp.allclose(score, score_ref, atol=2e-4, rtol=2e-4), "case-1 score mismatch"
    assert jnp.allclose(loss, loss_ref, atol=2e-4, rtol=2e-4), "case-1 loss mismatch"

    # Case 2: larger graph exercising the tiled structure-reconstruction kernel
    # (2x2 grid: parallel row tiles, reduction over column tiles, resident accumulator).
    N2, F2, H2 = 256, 64, 32
    seq2 = jax.random.normal(k2_feat, (1, N2, F2), jnp.float32)
    adj2 = make_adj(k2_adj, N2, p=0.05)[None]
    params2 = make_params(k2_par, F2, H2)

    loss2, score2 = jax.block_until_ready(
        anomalydae_forward(seq2, adj2, params2, tile_n=128, tile_m=128))
    loss2_ref, score2_ref = _forward_reference(seq2[0], adj2[0], params2)
    assert jnp.allclose(score2, score2_ref, atol=3e-4, rtol=3e-4), "case-2 score mismatch"
    assert jnp.allclose(loss2, loss2_ref, atol=3e-4, rtol=3e-4), "case-2 loss mismatch"

    print("KERNEL_OK")
</pallas_src>

<mosaic_0001>
module attributes {stable_mosaic.version = 11 : i64} {
  func.func @_stru_err_kernel(%arg0: i32, %arg1: i32, %arg2: memref<16x16xf32, #tpu.memory_space<vmem>>, %arg3: memref<16x32xf32, #tpu.memory_space<vmem>>, %arg4: memref<16x32xf32, #tpu.memory_space<vmem>>, %arg5: memref<16x1xf32, #tpu.memory_space<vmem>>) attributes {dimension_semantics = [#tpu.dimension_semantics<parallel>, #tpu.dimension_semantics<arbitrary>], iteration_bounds = array<i64: 1, 1>, scalar_prefetch = 0 : i64, scratch_operands = 0 : i64, tpu.core_type = #tpu.core_type<tc>, window_params = [{transform_indices = @transform_0, window_bounds = array<i64: 16, 16>}, {transform_indices = @transform_1, window_bounds = array<i64: 16, 32>}, {transform_indices = @transform_2, window_bounds = array<i64: 16, 32>}, {transform_indices = @transform_3, window_bounds = array<i64: 16, 1>}]} {
    %c0_i32 = arith.constant 0 : i32
    %0 = arith.cmpi eq, %arg1, %c0_i32 : i32
    %1 = arith.extui %0 : i1 to i32
    %c0_i32_0 = arith.constant 0 : i32
    %2 = arith.cmpi ne, %1, %c0_i32_0 : i32
    scf.if %2 {
      %cst_16 = arith.constant 0.000000e+00 : f32
      %24 = vector.broadcast %cst_16 : f32 to vector<16x1xf32>
      %c0_17 = arith.constant 0 : index
      %c0_18 = arith.constant 0 : index
      %25 = vector.load %arg5[%c0_17, %c0_18] : memref<16x1xf32, #tpu.memory_space<vmem>>, vector<16x1xf32>
      tpu.vector_store %arg5[%c0_17, %c0_18], %24 {strides = array<i32>} : memref<16x1xf32, #tpu.memory_space<vmem>>, vector<16x1xf32>,
    } else {
    }
    %c0 = arith.constant 0 : index
    %c0_1 = arith.constant 0 : index
    %3 = vector.load %arg3[%c0, %c0_1] : memref<16x32xf32, #tpu.memory_space<vmem>>, vector<16x32xf32>
    %c0_2 = arith.constant 0 : index
    %c0_3 = arith.constant 0 : index
    %4 = vector.load %arg4[%c0_2, %c0_3] : memref<16x32xf32, #tpu.memory_space<vmem>>, vector<16x32xf32>
    %cst = arith.constant dense<0.000000e+00> : vector<16x16xf32>
    %5 = tpu.matmul %3, %4, %cst {dimension_numbers = #tpu.dot_dimension_numbers<[1], [1], [0], [0], [0, 0, 1, 0], [], []>} : vector<16x32xf32>, vector<16x32xf32>, vector<16x16xf32> -> vector<16x16xf32>
    %cst_4 = arith.constant 0.000000e+00 : f32
    %6 = vector.broadcast %cst_4 : f32 to vector<16x16xf32>
    %7 = arith.subf %6, %5 : vector<16x16xf32>
    %8 = math.exp %7 : vector<16x16xf32>
    %cst_5 = arith.constant 1.000000e+00 : f32
    %9 = vector.broadcast %cst_5 : f32 to vector<16x16xf32>
    %10 = arith.addf %9, %8 : vector<16x16xf32>
    %cst_6 = arith.constant 1.000000e+00 : f32
    %11 = vector.broadcast %cst_6 : f32 to vector<16x16xf32>
    %12 = arith.divf %11, %10 : vector<16x16xf32>
    %c0_7 = arith.constant 0 : index
    %c0_8 = arith.constant 0 : index
    %13 = vector.load %arg2[%c0_7, %c0_8] : memref<16x16xf32, #tpu.memory_space<vmem>>, vector<16x16xf32>
    %14 = arith.subf %13, %12 : vector<16x16xf32>
    %c0_9 = arith.constant 0 : index
    %c0_10 = arith.constant 0 : index
    %15 = vector.load %arg5[%c0_9, %c0_10] : memref<16x1xf32, #tpu.memory_space<vmem>>, vector<16x1xf32>
    %16 = arith.mulf %14, %14 : vector<16x16xf32>
    %cst_11 = arith.constant dense<0.000000e+00> : vector<16xf32>
    %17 = vector.multi_reduction <add>, %16, %cst_11 [1] : vector<16x16xf32> to vector<16xf32>
    %18 = vector.shape_cast %17 : vector<16xf32> to vector<16x1xf32>
    %19 = arith.addf %15, %18 : vector<16x1xf32>
    %c0_12 = arith.constant 0 : index
    %c0_13 = arith.constant 0 : index
    %20 = vector.load %arg5[%c0_12, %c0_13] : memref<16x1xf32, #tpu.memory_space<vmem>>, vector<16x1xf32>
    tpu.vector_store %arg5[%c0_12, %c0_13], %19 {strides = array<i32>} : memref<16x1xf32, #tpu.memory_space<vmem>>, vector<16x1xf32>,
    %c0_i32_14 = arith.constant 0 : i32
    %21 = arith.cmpi eq, %arg1, %c0_i32_14 : i32
    %22 = arith.extui %21 : i1 to i32
    %c0_i32_15 = arith.constant 0 : i32
    %23 = arith.cmpi ne, %22, %c0_i32_15 : i32
    scf.if %23 {
      %c0_16 = arith.constant 0 : index
      %c0_17 = arith.constant 0 : index
      %24 = vector.load %arg5[%c0_16, %c0_17] : memref<16x1xf32, #tpu.memory_space<vmem>>, vector<16x1xf32>
      %25 = math.sqrt %24 : vector<16x1xf32>
      %c0_18 = arith.constant 0 : index
      %c0_19 = arith.constant 0 : index
      %26 = vector.load %arg5[%c0_18, %c0_19] : memref<16x1xf32, #tpu.memory_space<vmem>>, vector<16x1xf32>
      tpu.vector_store %arg5[%c0_18, %c0_19], %25 {strides = array<i32>} : memref<16x1xf32, #tpu.memory_space<vmem>>, vector<16x1xf32>,
    } else {
    }
    return
  }
  func.func @transform_0(%arg0: i32, %arg1: i32) -> (i32, i32) {
    %c0_i32 = arith.constant 0 : i32
    return %arg0, %arg1 : i32, i32
  }
  func.func @transform_1(%arg0: i32, %arg1: i32) -> (i32, i32) {
    %c0_i32 = arith.constant 0 : i32
    %c0_i32_0 = arith.constant 0 : i32
    return %arg0, %c0_i32 : i32, i32
  }
  func.func @transform_2(%arg0: i32, %arg1: i32) -> (i32, i32) {
    %c0_i32 = arith.constant 0 : i32
    %c0_i32_0 = arith.constant 0 : i32
    return %arg1, %c0_i32 : i32, i32
  }
  func.func @transform_3(%arg0: i32, %arg1: i32) -> (i32, i32) {
    %c0_i32 = arith.constant 0 : i32
    %c0_i32_0 = arith.constant 0 : i32
    return %arg0, %c0_i32 : i32, i32
  }
}

module attributes {stable_mosaic.version = 11 : i64} {
  func.func @_encoder_kernel(%arg0: memref<16x32xf32, #tpu.memory_space<vmem>>, %arg1: memref<16x16xf32, #tpu.memory_space<vmem>>, %arg2: memref<32x32xf32, #tpu.memory_space<vmem>>, %arg3: memref<1x32xf32, #tpu.memory_space<vmem>>, %arg4: memref<32x32xf32, #tpu.memory_space<vmem>>, %arg5: memref<1x32xf32, #tpu.memory_space<vmem>>, %arg6: memref<1x32xf32, #tpu.memory_space<vmem>>, %arg7: memref<1x32xf32, #tpu.memory_space<vmem>>, %arg8: memref<32x32xf32, #tpu.memory_space<vmem>>, %arg9: memref<1x32xf32, #tpu.memory_space<vmem>>, %arg10: memref<32x32xf32, #tpu.memory_space<vmem>>, %arg11: memref<1x32xf32, #tpu.memory_space<vmem>>, %arg12: memref<16x32xf32, #tpu.memory_space<vmem>>, %arg13: memref<16x1xf32, #tpu.memory_space<vmem>>) attributes {dimension_semantics = [], scalar_prefetch = 0 : i64, scratch_operands = 0 : i64, tpu.core_type = #tpu.core_type<tc>} {
    %c0 = arith.constant 0 : index
    %c0_0 = arith.constant 0 : index
    %0 = vector.load %arg0[%c0, %c0_0] : memref<16x32xf32, #tpu.memory_space<vmem>>, vector<16x32xf32>
    %c0_1 = arith.constant 0 : index
    %c0_2 = arith.constant 0 : index
    %1 = vector.load %arg1[%c0_1, %c0_2] : memref<16x16xf32, #tpu.memory_space<vmem>>, vector<16x16xf32>
    %c0_3 = arith.constant 0 : index
    %c0_4 = arith.constant 0 : index
    %2 = vector.load %arg2[%c0_3, %c0_4] : memref<32x32xf32, #tpu.memory_space<vmem>>, vector<32x32xf32>
    %cst = arith.constant dense<0.000000e+00> : vector<16x32xf32>
    %3 = tpu.matmul %0, %2, %cst {dimension_numbers = #tpu.dot_dimension_numbers<[1], [1], [0], [0], [0, 0, 1, 0], [], []>} : vector<16x32xf32>, vector<32x32xf32>, vector<16x32xf32> -> vector<16x32xf32>
    %c0_5 = arith.constant 0 : index
    %c0_6 = arith.constant 0 : index
    %4 = vector.load %arg3[%c0_5, %c0_6] : memref<1x32xf32, #tpu.memory_space<vmem>>, vector<1x32xf32>
    %5 = vector.broadcast %4 : vector<1x32xf32> to vector<16x32xf32>
    %6 = arith.addf %3, %5 : vector<16x32xf32>
    %cst_7 = arith.constant 0.000000e+00 : f32
    %7 = vector.broadcast %cst_7 : f32 to vector<16x32xf32>
    %8 = arith.maximumf %6, %7 : vector<16x32xf32>
    %c0_8 = arith.constant 0 : index
    %c0_9 = arith.constant 0 : index
    %9 = vector.load %arg4[%c0_8, %c0_9] : memref<32x32xf32, #tpu.memory_space<vmem>>, vector<32x32xf32>
    %cst_10 = arith.constant dense<0.000000e+00> : vector<16x32xf32>
    %10 = tpu.matmul %8, %9, %cst_10 {dimension_numbers = #tpu.dot_dimension_numbers<[1], [1], [0], [0], [0, 0, 1, 0], [], []>} : vector<16x32xf32>, vector<32x32xf32>, vector<16x32xf32> -> vector<16x32xf32>
    %c0_11 = arith.constant 0 : index
    %c0_12 = arith.constant 0 : index
    %11 = vector.load %arg5[%c0_11, %c0_12] : memref<1x32xf32, #tpu.memory_space<vmem>>, vector<1x32xf32>
    %cst_13 = arith.constant dense<0.000000e+00> : vector<16x1xf32>
    %12 = tpu.matmul %10, %11, %cst_13 {dimension_numbers = #tpu.dot_dimension_numbers<[1], [1], [0], [0], [0, 0, 1, 0], [], []>} : vector<16x32xf32>, vector<1x32xf32>, vector<16x1xf32> -> vector<16x1xf32>
    %c0_14 = arith.constant 0 : index
    %c0_15 = arith.constant 0 : index
    %13 = vector.load %arg6[%c0_14, %c0_15] : memref<1x32xf32, #tpu.memory_space<vmem>>, vector<1x32xf32>
    %cst_16 = arith.constant dense<0.000000e+00> : vector<1x16xf32>
    %14 = tpu.matmul %13, %10, %cst_16 {dimension_numbers = #tpu.dot_dimension_numbers<[1], [1], [0], [0], [0, 0, 1, 0], [], []>} : vector<1x32xf32>, vector<16x32xf32>, vector<1x16xf32> -> vector<1x16xf32>
    %15 = vector.broadcast %12 : vector<16x1xf32> to vector<16x16xf32>
    %16 = vector.broadcast %14 : vector<1x16xf32> to vector<16x16xf32>
    %17 = arith.addf %15, %16 : vector<16x16xf32>
    %cst_17 = arith.constant 0.000000e+00 : f32
    %18 = vector.broadcast %cst_17 : f32 to vector<16x16xf32>
    %19 = arith.cmpf oge, %17, %18 : vector<16x16xf32>
    %cst_18 = arith.constant 2.000000e-01 : f32
    %20 = vector.broadcast %cst_18 : f32 to vector<16x16xf32>
    %21 = arith.mulf %20, %17 : vector<16x16xf32>
    %22 = arith.select %19, %17, %21 : vector<16x16xi1>, vector<16x16xf32>
    %23 = tpu.iota {dimensions = array<i32: 0>} : vector<16x16xi32>
    %24 = tpu.iota {dimensions = array<i32: 1>} : vector<16x16xi32>
    %cst_19 = arith.constant 0.000000e+00 : f32
    %25 = vector.broadcast %cst_19 : f32 to vector<16x16xf32>
    %26 = arith.cmpf ogt, %1, %25 : vector<16x16xf32>
    %27 = arith.cmpi eq, %23, %24 : vector<16x16xi32>
    %28 = arith.ori %26, %27 : vector<16x16xi1>
    %cst_20 = arith.constant -1.000000e+30 : f32
    %29 = vector.broadcast %cst_20 : f32 to vector<16x16xf32>
    %30 = arith.select %28, %22, %29 : vector<16x16xi1>, vector<16x16xf32>
    %cst_21 = arith.constant dense<0xFF800000> : vector<16xf32>
    %31 = vector.multi_reduction <maximumf>, %30, %cst_21 [0] : vector<16x16xf32> to vector<16xf32>
    %32 = vector.shape_cast %31 : vector<16xf32> to vector<1x16xf32>
    %33 = vector.broadcast %32 : vector<1x16xf32> to vector<16x16xf32>
    %34 = arith.subf %30, %33 : vector<16x16xf32>
    %35 = math.exp %34 : vector<16x16xf32>
    %cst_22 = arith.constant dense<0.000000e+00> : vector<16xf32>
    %36 = vector.multi_reduction <add>, %35, %cst_22 [0] : vector<16x16xf32> to vector<16xf32>
    %37 = vector.shape_cast %36 : vector<16xf32> to vector<1x16xf32>
    %cst_23 = arith.constant 1.000000e-16 : f32
    %38 = vector.broadcast %cst_23 : f32 to vector<1x16xf32>
    %39 = arith.addf %37, %38 : vector<1x16xf32>
    %40 = vector.broadcast %39 : vector<1x16xf32> to vector<16x16xf32>
    %41 = arith.divf %35, %40 : vector<16x16xf32>
    %cst_24 = arith.constant dense<0.000000e+00> : vector<16x32xf32>
    %42 = tpu.matmul %41, %10, %cst_24 {dimension_numbers = #tpu.dot_dimension_numbers<[0], [0], [1], [1], [0, 1, 1, 1], [], []>} : vector<16x16xf32>, vector<16x32xf32>, vector<16x32xf32> -> vector<16x32xf32>
    %c0_25 = arith.constant 0 : index
    %c0_26 = arith.constant 0 : index
    %43 = vector.load %arg7[%c0_25, %c0_26] : memref<1x32xf32, #tpu.memory_space<vmem>>, vector<1x32xf32>
    %44 = vector.broadcast %43 : vector<1x32xf32> to vector<16x32xf32>
    %45 = arith.addf %42, %44 : vector<16x32xf32>
    %c0_27 = arith.constant 0 : index
    %c0_28 = arith.constant 0 : index
    %46 = vector.load %arg12[%c0_27, %c0_28] : memref<16x32xf32, #tpu.memory_space<vmem>>, vector<16x32xf32>
    tpu.vector_store %arg12[%c0_27, %c0_28], %45 {strides = array<i32>} : memref<16x32xf32, #tpu.memory_space<vmem>>, vector<16x32xf32>,
    %c0_29 = arith.constant 0 : index
    %c0_30 = arith.constant 0 : index
    %47 = vector.load %arg8[%c0_29, %c0_30] : memref<32x32xf32, #tpu.memory_space<vmem>>, vector<32x32xf32>
    %cst_31 = arith.constant dense<0.000000e+00> : vector<16x32xf32>
    %48 = tpu.matmul %0, %47, %cst_31 {dimension_numbers = #tpu.dot_dimension_numbers<[1], [1], [0], [0], [0, 0, 1, 0], [], []>} : vector<16x32xf32>, vector<32x32xf32>, vector<16x32xf32> -> vector<16x32xf32>
    %c0_32 = arith.constant 0 : index
    %c0_33 = arith.constant 0 : index
    %49 = vector.load %arg9[%c0_32, %c0_33] : memref<1x32xf32, #tpu.memory_space<vmem>>, vector<1x32xf32>
    %50 = vector.broadcast %49 : vector<1x32xf32> to vector<16x32xf32>
    %51 = arith.addf %48, %50 : vector<16x32xf32>
    %cst_34 = arith.constant 0.000000e+00 : f32
    %52 = vector.broadcast %cst_34 : f32 to vector<16x32xf32>
    %53 = arith.maximumf %51, %52 : vector<16x32xf32>
    %c0_35 = arith.constant 0 : index
    %c0_36 = arith.constant 0 : index
    %54 = vector.load %arg10[%c0_35, %c0_36] : memref<32x32xf32, #tpu.memory_space<vmem>>, vector<32x32xf32>
    %cst_37 = arith.constant dense<0.000000e+00> : vector<16x32xf32>
    %55 = tpu.matmul %53, %54, %cst_37 {dimension_numbers = #tpu.dot_dimension_numbers<[1], [1], [0], [0], [0, 0, 1, 0], [], []>} : vector<16x32xf32>, vector<32x32xf32>, vector<16x32xf32> -> vector<16x32xf32>
    %c0_38 = arith.constant 0 : index
    %c0_39 = arith.constant 0 : index
    %56 = vector.load %arg11[%c0_38, %c0_39] : memref<1x32xf32, #tpu.memory_space<vmem>>, vector<1x32xf32>
    %57 = vector.broadcast %56 : vector<1x32xf32> to vector<16x32xf32>
    %58 = arith.addf %55, %57 : vector<16x32xf32>
    %59 = arith.subf %0, %58 : vector<16x32xf32>
    %60 = arith.mulf %59, %59 : vector<16x32xf32>
    %cst_40 = arith.constant dense<0.000000e+00> : vector<16xf32>
    %61 = vector.multi_reduction <add>, %60, %cst_40 [1] : vector<16x32xf32> to vector<16xf32>
    %62 = vector.shape_cast %61 : vector<16xf32> to vector<16x1xf32>
    %63 = math.sqrt %62 : vector<16x1xf32>
    %c0_41 = arith.constant 0 : index
    %c0_42 = arith.constant 0 : index
    %64 = vector.load %arg13[%c0_41, %c0_42] : memref<16x1xf32, #tpu.memory_space<vmem>>, vector<16x1xf32>
    tpu.vector_store %arg13[%c0_41, %c0_42], %63 {strides = array<i32>} : memref<16x1xf32, #tpu.memory_space<vmem>>, vector<16x1xf32>,
    return
  }
}

</mosaic_0001>

<bundles_post_ra>
// kernel: anomalydae_forward.3
= control target key start
LH: loop header
LB: loop body
LE: loop exit
PB: predicated region body
PF: predicated region fallthrough
CT: control target
= control target key end

     0   :  { %8 = vsyncpa [#allocation3], 0  ;;  %s219_s15 = smov [#allocation2]   ;;  %s220_s17 = smov 128   ;;  %s294_s0 = inlined_call_operand.hbm [shape: f32[16,16], index: 0, kind: input, shape index: {}]   ;;  %s295_s1 = inlined_call_operand.vmem [shape: f32[16,32], index: 1, kind: input, shape index: {}, may-alias: {1,2}]   ;;  %s296_s2 = inlined_call_operand.vmem [shape: f32[16,32], index: 2, kind: input, shape index: {}, may-alias: {1,2}]   ;;  %s297_s3 = inlined_call_operand.vmem [shape: f32[16,1], index: 3, kind: output, shape index: {}]  }
   0x1   :  { %s13_s14 = sshll.u32 %s294_s0, 4  ;;  %s15_s16 = sshll.u32 %s219_s15, 4  ;;  %s14_s14 = int_to_ptr.hbm [resolvable:$true] %s13_s14  ;;  %s16_s16 = int_to_ptr.vmem [resolvable:$true] %s15_s16 }
   0x2   :  { %s221_s18 = smov 8  }
   0x3   :  { %21 = dma.hbm_to_vmem [thread:$0]  %s14_s14, 256, %s16_s16, [#allocation3], %s220_s17, %s220_s17, %s221_s18  }
   0x4   :  { %217 = dma.done.wait [#allocation3], 256  }
   0x5   :  { %218 = vsyncadd [#allocation3], 4294967040  ;;  %vm41_vm0 = vcmask 261120   ;;  %v40_v0 = vld [vmem:[%s296_s2 + $0x8] sm:$0xff]  ;;  %v39_v1 = vld [vmem:[%s296_s2] sm:$0xff]  ;;  %vm34_vm1 = vcmask 7168  }
   0x6   :  { %171 = vmatpush.xpose.msk.msra.mxu0 %vm41_vm0, %v40_v0  ;;  %175 = vmatpush.xpose.msk.msra.mxu1 %vm41_vm0, %v40_v0  ;;  %v37_v2 = vld [vmem:[%s295_s1] sm:$0xff]  ;;  %v38_v3 = vld [vmem:[%s295_s1 + $0x8] sm:$0xff]  ;;  %v222_v14 = vmov 0.0   ;;  %vm123_vm10 = vcmask 130048  }
   0x7   :  { %35 = vst.msk [vmem:[%s297_s3] sm:$0xff] %vm34_vm1, %v222_v14  ;;  %v115_v29 = vld [vmem:[#allocation2] sm:$0xff]  ;;  %v116_v37 = vld [vmem:[#allocation2 + $0x8] sm:$0xff] }
   0x8   :  { %36 = vst.msk [vmem:[%s297_s3 + $0x8] sm:$0xff] %vm34_vm1, %v222_v14 }
   0xa   :  { %172 = vmatpush.xpose.msk.msra.mxu0 %vm41_vm0, %v39_v1  ;;  %176 = vmatpush.xpose.msk.msra.mxu1 %vm41_vm0, %v39_v1 }
   0xd   :  { %173 = vmatmul.msk.f32.vlgmr.msra.gmra.mxu0 %vm41_vm0, %v37_v2  ;;  %174 = vmatmul.msk.f32.vlgmr.msra.gmra.mxu1 %vm41_vm0, %v38_v3 }
   0xe   :  { %v119_v43 = vld [vmem:[%s297_s3] sm:$0xff] }
   0xf   :  { %v120_v46 = vld [vmem:[%s297_s3 + $0x8] sm:$0xff] }
  0x8a   :  { %v71_v4 = vpop.f32.mrf.mxu0  ;;  %v74_v5 = vpop.f32.mrf.mxu1 }
  0x8b   :  { %v77_v6 = vsub.f32 0.0, %v71_v4  ;;  %v78_v7 = vsub.f32 0.0, %v74_v5 }
  0x8d   :  { %v79_v8 = vmul.f32 1.442695, %v77_v6  ;;  %v81_v9 = vmul.f32 1.442695, %v78_v7 }
  0x8f   :  { %181 = vpow2.f32 %v79_v8 }
  0x90   :  { %183 = vpow2.f32 %v81_v9 }
  0x95   :  { %v182_v10 = vpop.eup %181 }
  0x96   :  { %v184_v11 = vpop.eup %183  ;;  %v83_v12 = vadd.f32 1.0, %v182_v10 }
  0x97   :  { %v84_v13 = vadd.f32 1.0, %v184_v11 }
  0x98   :  { %185 = vrcp.f32 %v83_v12  ;;  %v96_v20 = vand.u32 2147483648, %v83_v12  ;;  %v94_v23 = vand.u32 2147483647, %v83_v12  ;;  %vm90_vm5 = vweird.f32 %v83_v12 }
  0x99   :  { %187 = vrcp.f32 %v84_v13  ;;  %vm105_vm3 = vweird.f32 %v84_v13  ;;  %v111_v25 = vand.u32 2147483648, %v84_v13  ;;  %v109_v27 = vand.u32 2147483647, %v84_v13 }
  0x9a   :  { %v97_v28 = vor.u32 1.1754944e-38, %v96_v20  ;;  %vm95_vm7 = vcmp.eq.f32.partialorder %v94_v23, 8.507059e+37 }
  0x9b   :  { %v112_v34 = vor.u32 1.1754944e-38, %v111_v25  ;;  %vm110_vm9 = vcmp.eq.f32.partialorder %v109_v27, 8.507059e+37 }
  0x9e   :  { %v186_v15 = vpop.eup %185 }
  0x9f   :  { %v188_v16 = vpop.eup %187  ;;  %v86_v17 = vmul.f32 %v186_v15, %v83_v12  ;;  %vm91_vm2 = vweird.f32 %v186_v15 }
  0xa0   :  { %v101_v18 = vmul.f32 %v188_v16, %v84_v13  ;;  %vm106_vm4 = vweird.f32 %v188_v16  ;;  %vm92_vm6 = vmor %vm90_vm5, %vm91_vm2 }
  0xa1   :  { %v87_v19 = vsub.f32 1.0, %v86_v17  ;;  %vm107_vm8 = vmor %vm105_vm3, %vm106_vm4 }
  0xa2   :  { %v102_v21 = vsub.f32 1.0, %v101_v18 }
  0xa3   :  { %v88_v22 = vmul.f32 %v186_v15, %v87_v19 }
  0xa4   :  { %v103_v24 = vmul.f32 %v188_v16, %v102_v21 }
  0xa5   :  { %v89_v26 = vadd.f32 %v186_v15, %v88_v22 }
  0xa6   :  { %v104_v30 = vadd.f32 %v188_v16, %v103_v24 }
  0xa7   :  { %v93_v31 = vsel %vm92_vm6, %v186_v15, %v89_v26 }
  0xa8   :  { %v98_v32 = vsel %vm95_vm7, %v97_v28, %v93_v31  ;;  %v108_v33 = vsel %vm107_vm8, %v188_v16, %v104_v30 }
  0xa9   :  { %v117_v35 = vsub.f32 %v115_v29, %v98_v32  ;;  %v113_v36 = vsel %vm110_vm9, %v112_v34, %v108_v33 }
  0xaa   :  { %v118_v40 = vsub.f32 %v116_v37, %v113_v36 }
  0xab   :  { %v121_v38 = vmul.f32 %v117_v35, %v117_v35 }
  0xac   :  { %v122_v41 = vmul.f32 %v118_v40, %v118_v40 }
  0xad   :  { %v124_v39 = vsel %vm123_vm10, %v121_v38, 0.0 }
  0xae   :  { %125 = vadd.xlane.f32.xlu0 %v124_v39  ;;  %v127_v42 = vsel %vm123_vm10, %v122_v41, 0.0 }
  0xb6   :  { %128 = vadd.xlane.f32.xlu0 %v127_v42 }
 0x121   :  { %v126_v44 = vpop.xlane.xlu0 %125 }
 0x122   :  { %v130_v45 = vadd.f32 %v126_v44, %v119_v43 }
 0x124   :  { %133 = vst.msk [vmem:[%s297_s3] sm:$0xff] %vm34_vm1, %v130_v45 }
 0x129   :  { %v129_v47 = vpop.xlane.xlu0 %128 }
 0x12a   :  { %v131_v48 = vadd.f32 %v129_v47, %v120_v46 }
 0x12b   :  { %v138_v49 = vld [vmem:[%s297_s3] sm:$0xff] }
 0x12c   :  { %189 = vrsqrt.f32 %v138_v49  ;;  %134 = vst.msk [vmem:[%s297_s3 + $0x8] sm:$0xff] %vm34_vm1, %v131_v48  ;;  %vm147_vm11 = vcmp.eq.f32.partialorder %v138_v49, inf  ;;  %v150_v61 = vand.u32 2147483648, %v138_v49  ;;  %vm149_vm12 = vcmp.eq.f32.partialorder %v138_v49, 0.0 }
 0x132   :  { %v190_v50 = vpop.eup %189 }
 0x133   :  { %v141_v51 = vmul.f32 %v190_v50, %v138_v49  ;;  %v139_v52 = vld [vmem:[%s297_s3 + $0x8] sm:$0xff] }
 0x134   :  { %191 = vrsqrt.f32 %v139_v52  ;;  %vm159_vm13 = vcmp.eq.f32.partialorder %v139_v52, inf  ;;  %v162_v4 = vand.u32 2147483648, %v139_v52  ;;  %vm161_vm14 = vcmp.eq.f32.partialorder %v139_v52, 0.0 }
 0x135   :  { %v142_v53 = vmul.f32 %v190_v50, %v141_v51 }
 0x137   :  { %v143_v54 = vmul.f32 0.5, %v142_v53 }
 0x139   :  { %v144_v55 = vsub.f32 1.5, %v143_v54 }
 0x13a   :  { %v192_v56 = vpop.eup %191 }
 0x13b   :  { %v145_v57 = vmul.f32 %v190_v50, %v144_v55  ;;  %v153_v58 = vmul.f32 %v192_v56, %v139_v52 }
 0x13d   :  { %v146_v59 = vmul.f32 %v145_v57, %v138_v49  ;;  %v154_v60 = vmul.f32 %v192_v56, %v153_v58 }
 0x13f   :  { %v148_v62 = vsel %vm147_vm11, %v138_v49, %v146_v59  ;;  %v155_v63 = vmul.f32 0.5, %v154_v60 }
 0x140   :  { %v151_v0 = vsel %vm149_vm12, %v150_v61, %v148_v62 }
 0x141   :  { %164 = vst.msk [vmem:[%s297_s3] sm:$0xff] %vm34_vm1, %v151_v0  ;;  %v156_v1 = vsub.f32 1.5, %v155_v63 }
 0x143   :  { %v157_v2 = vmul.f32 %v192_v56, %v156_v1 }
 0x145   :  { %v158_v3 = vmul.f32 %v157_v2, %v139_v52 }
 0x147   :  { %v160_v5 = vsel %vm159_vm13, %v139_v52, %v158_v3 }
 0x148   :  { %v163_v6 = vsel %vm161_vm14, %v162_v4, %v160_v5 }
 0x149   :  { %165 = vst.msk [vmem:[%s297_s3 + $0x8] sm:$0xff] %vm34_vm1, %v163_v6 }
 0x14a   :  { %170 = vsyncpa [#allocation3], 1 }

// kernel: anomalydae_forward.2
= control target key start
LH: loop header
LB: loop body
LE: loop exit
PB: predicated region body
PF: predicated region fallthrough
CT: control target
= control target key end

     0   :  { %19 = vsyncpa [#allocation3], 0  ;;  %s952_s0 = inlined_call_operand.hbm [shape: f32[16,32], index: 0, kind: input, shape index: {}]   ;;  %s953_s1 = inlined_call_operand.hbm [shape: f32[16,16], index: 1, kind: input, shape index: {}]   ;;  %s954_s2 = inlined_call_operand.hbm [shape: f32[32,32], index: 2, kind: input, shape index: {}]   ;;  %s955_s3 = inlined_call_operand.vmem [shape: f32[1,32], index: 3, kind: input, shape index: {}]   ;;  %s956_s4 = inlined_call_operand.hbm [shape: f32[32,32], index: 4, kind: input, shape index: {}]   ;;  %s957_s5 = inlined_call_operand.vmem [shape: f32[1,32], index: 5, kind: input, shape index: {}]   ;;  %s958_s6 = inlined_call_operand.vmem [shape: f32[1,32], index: 6, kind: input, shape index: {}]   ;;  %s959_s7 = inlined_call_operand.vmem [shape: f32[1,32], index: 7, kind: input, shape index: {}]   ;;  %s960_s8 = inlined_call_operand.hbm [shape: f32[32,32], index: 8, kind: input, shape index: {}]   ;;  %s961_s9 = inlined_call_operand.vmem [shape: f32[1,32], index: 9, kind: input, shape index: {}]   ;;  %s962_s10 = inlined_call_operand.hbm [shape: f32[32,32], index: 10, kind: input, shape index: {}]   ;;  %s963_s11 = inlined_call_operand.vmem [shape: f32[1,32], index: 11, kind: input, shape index: {}]   ;;  %s964_s12 = inlined_call_operand.vmem [shape: f32[16,32], index: 12, kind: output, shape index: {0}]   ;;  %s965_s13 = inlined_call_operand.vmem [shape: f32[16,1], index: 13, kind: output, shape index: {1}]  }
   0x1   :  { %20 = vsyncpa [#allocation5], 0 }
   0x2   :  { %21 = vsyncpa [#allocation8], 0 }
   0x3   :  { %22 = vsyncpa [#allocation11], 0  ;;  %s40_s27 = sshll.u32 %s953_s1, 4  ;;  %s759_s28 = smov [#allocation4]   ;;  %s41_s27 = int_to_ptr.hbm [resolvable:$true] %s40_s27 }
   0x4   :  { %s42_s29 = sshll.u32 %s759_s28, 4  ;;  %s68_s15 = sshll.u32 %s956_s4, 4  ;;  %s43_s29 = int_to_ptr.vmem [resolvable:$true] %s42_s29  ;;  %s69_s15 = int_to_ptr.hbm [resolvable:$true] %s68_s15 }
   0x5   :  { %s760_s16 = smov 128   ;;  %s761_s17 = smov 8  }
   0x6   :  { %48 = dma.hbm_to_vmem [thread:$0]  %s41_s27, 256, %s43_s29, [#allocation5], %s760_s16, %s760_s16, %s761_s17  }
   0x7   :  { %s762_s18 = smov [#allocation7]   ;;  %s27_s1 = sshll.u32 %s952_s0, 4  ;;  %s28_s1 = int_to_ptr.hbm [resolvable:$true] %s27_s1 }
   0x8   :  { %s70_s19 = sshll.u32 %s762_s18, 4  ;;  %s53_s23 = sshll.u32 %s954_s2, 4  ;;  %s71_s19 = int_to_ptr.vmem [resolvable:$true] %s70_s19  ;;  %s54_s23 = int_to_ptr.hbm [resolvable:$true] %s53_s23 }
   0x9   :  { %76 = dma.hbm_to_vmem [thread:$0]  %s69_s15, 512, %s71_s19, [#allocation8], %s760_s16, %s760_s16, %s761_s17  }
   0xa   :  { %s763_s24 = smov [#allocation2]   ;;  %s764_s26 = smov [#allocation6]  }
   0xb   :  { %s29_s25 = sshll.u32 %s763_s24, 4  ;;  %s55_s0 = sshll.u32 %s764_s26, 4  ;;  %s30_s25 = int_to_ptr.vmem [resolvable:$true] %s29_s25  ;;  %s56_s0 = int_to_ptr.vmem [resolvable:$true] %s55_s0 }
   0xc   :  { %35 = dma.hbm_to_vmem [thread:$0]  %s28_s1, 256, %s30_s25, [#allocation3], %s760_s16, %s760_s16, %s761_s17  }
   0xd   :  { %s87_s29 = sshll.u32 %s960_s8, 4  ;;  %s102_s14 = sshll.u32 %s962_s10, 4  ;;  %s88_s29 = int_to_ptr.hbm [resolvable:$true] %s87_s29  ;;  %s103_s14 = int_to_ptr.hbm [resolvable:$true] %s102_s14 }
   0xe   :  { %61 = dma.hbm_to_vmem [thread:$0]  %s54_s23, 512, %s56_s0, [#allocation5], %s760_s16, %s760_s16, %s761_s17  }
   0xf   :  { %s765_s15 = smov [#allocation9]   ;;  %s766_s19 = smov [#allocation10]  }
  0x10   :  { %s89_s18 = sshll.u32 %s765_s15, 4  ;;  %s104_s8 = sshll.u32 %s766_s19, 4  ;;  %s90_s18 = int_to_ptr.vmem [resolvable:$true] %s89_s18  ;;  %s105_s8 = int_to_ptr.vmem [resolvable:$true] %s104_s8 }
  0x11   :  { %95 = dma.hbm_to_vmem [thread:$0]  %s88_s29, 512, %s90_s18, [#allocation8], %s760_s16, %s760_s16, %s761_s17  }
  0x12   :  { %110 = dma.hbm_to_vmem [thread:$0]  %s103_s14, 512, %s105_s8, [#allocation11], %s760_s16, %s760_s16, %s761_s17  }
  0x13   :  { %751 = dma.done.wait [#allocation3], 256  }
  0x14   :  { %752 = vsyncadd [#allocation3], 4294967040 }
  0x15   :  { %753 = dma.done.wait [#allocation5], 768  }
  0x16   :  { %754 = vsyncadd [#allocation5], 4294966528 }
  0x17   :  { %755 = dma.done.wait [#allocation8], 1024  }
  0x18   :  { %756 = vsyncadd [#allocation8], 4294966272 }
  0x19   :  { %757 = dma.done.wait [#allocation11], 512  }
  0x1a   :  { %758 = vsyncadd [#allocation11], 4294966784  ;;  %vm149_vm0 = vcmask 261120   ;;  %v144_v0 = vld [vmem:[#allocation6 + $0x18] sm:$0xff]  ;;  %v143_v1 = vld [vmem:[#allocation6 + $0x10] sm:$0xff]  ;;  %v289_v25 = vlaneseq  ;;  %vm302_vm9 = vcmask 130048  }
  0x1b   :  { %554 = vmatpush.xpose.msk.msra.mxu0 %vm149_vm0, %v144_v0  ;;  %v196_v2 = vld [vmem:[#allocation7 + $0x18] sm:$0xff]  ;;  %v195_v3 = vld [vmem:[#allocation7 + $0x10] sm:$0xff]  ;;  %v142_v4 = vld [vmem:[#allocation6 + $0x8] sm:$0xff]  ;;  %vm539_vm15 = vcmask 7168  }
  0x1c   :  { %560 = vmatpush.xpose.msk.msra.mxu1 %vm149_vm0, %v196_v2  ;;  %v194_v5 = vld [vmem:[#allocation7 + $0x8] sm:$0xff]  ;;  %v141_v6 = vld [vmem:[#allocation6] sm:$0xff]  ;;  %v290_v27 = vshrl.u32 %v289_v25, 7  ;;  %v293_v28 = vand.u32 127, %v289_v25  ;;  %v139_v29 = vld [vmem:[#allocation4] sm:$0xff] }
  0x1d   :  { %v880_v7 = vld [vmem:[#allocation2] sm:$0xff]  ;;  %v884_v8 = vld [vmem:[#allocation2 + $0x8] sm:$0xff]  ;;  %v140_v31 = vld [vmem:[#allocation4 + $0x8] sm:$0xff]  ;;  %vm294_vm1 = vcmp.gt.f32.partialorder %v139_v29, 0.0 }
  0x1e   :  { %v193_v9 = vld [vmem:[#allocation7] sm:$0xff]  ;;  %v291_v30 = vadd.s32 8, %v290_v27  ;;  %vm296_vm2 = vcmp.eq.s32.totalorder %v290_v27, %v293_v28  ;;  %vm295_vm3 = vcmp.gt.f32.partialorder %v140_v31, 0.0  ;;  %v458_v25 = vld [vmem:[#allocation10 + $0x10] sm:$0xff] }
  0x1f   :  { %555 = vmatpush.xpose.msk.msra.mxu0 %vm149_vm0, %v143_v1  ;;  %v592_v10 = vld [vmem:[%s955_s3] ss:$0 sm:$0xff]  ;;  %vm298_vm5 = vmor %vm294_vm1, %vm296_vm2 }
  0x20   :  { %561 = vmatpush.xpose.msk.msra.mxu1 %vm149_vm0, %v195_v3  ;;  %v593_v17 = vld [vmem:[%s957_s5] ss:$0 sm:$0xff]  ;;  %vm297_vm4 = vcmp.eq.s32.totalorder %v291_v30, %v293_v28 }
  0x21   :  { %v250_v24 = vld [vmem:[%s958_s6] sm:$0x1]  ;;  %vm299_vm8 = vmor %vm295_vm3, %vm297_vm4 }
  0x22   :  { %v456_v27 = vld [vmem:[#allocation10] sm:$0xff] }
  0x23   :  { %556 = vmatpush.xpose.msk.msra.mxu0 %vm149_vm0, %v142_v4  ;;  %v594_v28 = vld [vmem:[%s959_s7] ss:$0 sm:$0xff] }
  0x24   :  { %562 = vmatpush.xpose.msk.msra.mxu1 %vm149_vm0, %v194_v5 }
  0x27   :  { %557 = vmatpush.xpose.msk.msra.mxu0 %vm149_vm0, %v141_v6 }
  0x28   :  { %563 = vmatpush.xpose.msk.msra.mxu1 %vm149_vm0, %v193_v9 }
  0x2a   :  { %558 = vmatmul.msk.f32.vlgmr.msra.gmra.mxu0 %vm149_vm0, %v880_v7 }
  0x32   :  { %559 = vmatmul.msk.f32.gmra.mxu0 %vm149_vm0, %v884_v8 }
  0xa7   :  { %v185_v11 = vpop.f32.mrf.mxu0 }
  0xa8   :  { %v186_v12 = vadd.f32 %v592_v10, %v185_v11 }
  0xaa   :  { %v191_v13 = vmax.f32 %v186_v12, 0.0 }
  0xac   :  { %564 = vmatmul.msk.f32.vlgmr.msra.gmra.mxu1 %vm149_vm0, %v191_v13 }
  0xaf   :  { %v188_v14 = vpop.f32.mrf.mxu0 }
  0xb0   :  { %v189_v15 = vadd.f32 %v592_v10, %v188_v14 }
  0xb2   :  { %v192_v16 = vmax.f32 %v189_v15, 0.0 }
  0xb4   :  { %565 = vmatmul.msk.f32.gmra.mxu1 %vm149_vm0, %v192_v16 }
 0x129   :  { %v232_v18 = vpop.f32.mrf.mxu1 }
 0x12a   :  { %v242_v19 = vmul.f32 %v593_v17, %v232_v18 }
 0x12c   :  { %v244_v20 = vsel %vm149_vm0, %v242_v19, 0.0  ;;  %v413_v19 = vld [vmem:[#allocation9 + $0x10] sm:$0xff] }
 0x12d   :  { %245 = vadd.xlane.f32.xlu0 %v244_v20  ;;  %v412_v20 = vld [vmem:[#allocation9 + $0x8] sm:$0xff] }
 0x131   :  { %v235_v21 = vpop.f32.mrf.mxu1 }
 0x132   :  { %v243_v22 = vmul.f32 %v593_v17, %v235_v21  ;;  %566 = vmatpush.xpose.msk.msra.mxu2 %vm149_vm0, %v235_v21  ;;  %400 = vmatpush.msra.mxu3 %v235_v21  ;;  %v411_v21 = vld [vmem:[#allocation9] sm:$0xff] }
 0x134   :  { %401 = vmatpush.msra.mxu3 %v232_v18  ;;  %v247_v23 = vsel %vm149_vm0, %v243_v22, 0.0 }
 0x135   :  { %248 = vadd.xlane.f32.xlu0 %v247_v23 }
 0x136   :  { %567 = vmatpush.xpose.msk.msra.mxu2 %vm149_vm0, %v232_v18  ;;  %v414_v18 = vld [vmem:[#allocation9 + $0x18] sm:$0xff] }
 0x137   :  { %571 = vmatpush.xpose.msk.msrb.mxu3 %vm149_vm0, %v414_v18 }
 0x139   :  { %568 = vmatmul.msk.f32.vlgmr.msra.gmra.mxu2 %vm149_vm0, %v250_v24  ;;  %v459_v24 = vld [vmem:[#allocation10 + $0x18] sm:$0xff] }
 0x13a   :  { %577 = vmatpush.xpose.msk.msrb.mxu2 %vm149_vm0, %v459_v24 }
 0x13b   :  { %572 = vmatpush.xpose.msk.msrb.mxu3 %vm149_vm0, %v413_v19 }
 0x13e   :  { %578 = vmatpush.xpose.msk.msrb.mxu2 %vm149_vm0, %v458_v25 }
 0x13f   :  { %573 = vmatpush.xpose.msk.msrb.mxu3 %vm149_vm0, %v412_v20 }
 0x143   :  { %574 = vmatpush.xpose.msk.msrb.mxu3 %vm149_vm0, %v411_v21 }
 0x1a0   :  { %v246_v26 = vpop.xlane.xlu0 %245 }
 0x1a8   :  { %v249_v34 = vpop.xlane.xlu0 %248 }
 0x1bc   :  { %v277_v32 = vpop.f32.mrf.mxu2 }
 0x1bd   :  { %v280_v33 = vperm.slane %v277_v32, 0 }
 0x1bf   :  { %v281_v35 = vadd.f32 %v280_v33, %v246_v26  ;;  %v282_v36 = vadd.f32 %v280_v33, %v249_v34  ;;  %v457_v26 = vld [vmem:[#allocation10 + $0x8] sm:$0xff]  ;;  %v595_v33 = vld [vmem:[%s961_s9] ss:$0 sm:$0xff] }
 0x1c0   :  { %579 = vmatpush.xpose.msk.msrb.mxu2 %vm149_vm0, %v457_v26 }
 0x1c1   :  { %vm283_vm6 = vcmp.ge.f32.partialorder %v281_v35, 0.0  ;;  %vm284_vm7 = vcmp.ge.f32.partialorder %v282_v36, 0.0  ;;  %v285_v37 = vmul.f32 0.2, %v281_v35  ;;  %v286_v38 = vmul.f32 0.2, %v282_v36 }
 0x1c3   :  { %v287_v39 = vsel %vm283_vm6, %v281_v35, %v285_v37  ;;  %v288_v40 = vsel %vm284_vm7, %v282_v36, %v286_v38 }
 0x1c4   :  { %v300_v41 = vsel %vm298_vm5, %v287_v39, -1e+30  ;;  %v301_v42 = vsel %vm299_vm8, %v288_v40, -1e+30  ;;  %580 = vmatpush.xpose.msk.msrb.mxu2 %vm149_vm0, %v456_v27  ;;  %v596_v40 = vld [vmem:[%s963_s11] ss:$0 sm:$0xff] }
 0x1c5   :  { %v303_v43 = vsel %vm302_vm9, %v300_v41, -inf  ;;  %v304_v44 = vsel %vm302_vm9, %v301_v42, -inf }
 0x1c6   :  { %v305_v45 = vmax.f32 %v303_v43, %v304_v44 }
 0x1c8   :  { %v306_v46 = vrot.slane %v305_v45, 4 }
 0x1ca   :  { %v307_v47 = vmax.f32 %v305_v45, %v306_v46 }
 0x1cc   :  { %v308_v48 = vrot.slane %v307_v47, 2 }
 0x1ce   :  { %v309_v49 = vmax.f32 %v307_v47, %v308_v48 }
 0x1d0   :  { %v310_v50 = vrot.slane %v309_v49, 1 }
 0x1d2   :  { %v311_v51 = vmax.f32 %v309_v49, %v310_v50 }
 0x1d4   :  { %v313_v52 = vsub.f32 %v301_v42, %v311_v51  ;;  %v312_v53 = vsub.f32 %v300_v41, %v311_v51 }
 0x1d6   :  { %v316_v54 = vmul.f32 1.442695, %v313_v52  ;;  %v314_v55 = vmul.f32 1.442695, %v312_v53 }
 0x1d8   :  { %597 = vpow2.f32 %v316_v54 }
 0x1d9   :  { %599 = vpow2.f32 %v314_v55 }
 0x1de   :  { %v598_v56 = vpop.eup %597 }
 0x1df   :  { %v600_v57 = vpop.eup %599  ;;  %v319_v58 = vsel %vm302_vm9, %v598_v56, 0.0 }
 0x1e0   :  { %v318_v59 = vsel %vm302_vm9, %v600_v57, 0.0 }
 0x1e1   :  { %v320_v60 = vadd.f32 %v319_v58, %v318_v59 }
 0x1e3   :  { %v321_v61 = vrot.slane %v320_v60, 4 }
 0x1e5   :  { %v322_v62 = vadd.f32 %v321_v61, %v320_v60 }
 0x1e7   :  { %v323_v63 = vrot.slane %v322_v62, 2 }
 0x1e9   :  { %v324_v0 = vadd.f32 %v323_v63, %v322_v62 }
 0x1eb   :  { %v325_v1 = vrot.slane %v324_v0, 1 }
 0x1ed   :  { %v326_v2 = vadd.f32 %v325_v1, %v324_v0 }
 0x1ef   :  { %v327_v3 = vadd.f32 1e-16, %v326_v2 }
 0x1f1   :  { %601 = vrcp.f32 %v327_v3  ;;  %v339_v9 = vand.u32 2147483648, %v327_v3  ;;  %v337_v11 = vand.u32 2147483647, %v327_v3  ;;  %vm333_vm11 = vweird.f32 %v327_v3 }
 0x1f3   :  { %v340_v13 = vor.u32 1.1754944e-38, %v339_v9  ;;  %vm338_vm13 = vcmp.eq.f32.partialorder %v337_v11, 8.507059e+37 }
 0x1f7   :  { %v602_v4 = vpop.eup %601 }
 0x1f8   :  { %v329_v5 = vmul.f32 %v602_v4, %v327_v3  ;;  %vm334_vm10 = vweird.f32 %v602_v4 }
 0x1f9   :  { %vm335_vm12 = vmor %vm333_vm11, %vm334_vm10 }
 0x1fa   :  { %v330_v6 = vsub.f32 1.0, %v329_v5 }
 0x1fc   :  { %v331_v10 = vmul.f32 %v602_v4, %v330_v6 }
 0x1fe   :  { %v332_v12 = vadd.f32 %v602_v4, %v331_v10 }
 0x200   :  { %v336_v14 = vsel %vm335_vm12, %v602_v4, %v332_v12 }
 0x201   :  { %v341_v15 = vsel %vm338_vm13, %v340_v13, %v336_v14 }
 0x202   :  { %v342_v16 = vmul.f32 %v600_v57, %v341_v15  ;;  %v343_v17 = vmul.f32 %v598_v56, %v341_v15 }
 0x204   :  { %348 = vxpose.xlu1.b32.start [1/2] (short) (narrow) %v342_v16, 16 }
 0x20c   :  { %349 = vxpose.xlu1.b32.end [2/2] (short) (narrow) %v343_v17, 16 }
 0x2a8   :  { %v364_v22 = vpop.trf.xlu1 }
 0x2a9   :  { %569 = vmatmul.msk.f32.vlgmr.msra.gmra.mxu3 %vm302_vm9, %v364_v22 }
 0x2b0   :  { %v365_v23 = vpop.trf.xlu1 }
 0x2b1   :  { %570 = vmatmul.msk.f32.gmra.mxu3 %vm302_vm9, %v365_v23 }
 0x2b9   :  { %575 = vmatmul.msk.f32.vlgmr.msrb.gmra.mxu3 %vm149_vm0, %v880_v7 }
 0x2c1   :  { %576 = vmatmul.msk.f32.gmra.mxu3 %vm149_vm0, %v884_v8 }
 0x32c   :  { %v403_v29 = vpop.f32.mrf.mxu3 }
 0x32d   :  { %v404_v30 = vadd.f32 %v594_v28, %v403_v29 }
 0x32f   :  { %409 = vst.msk [vmem:[%s964_s12] sm:$0xff] %vm149_vm0, %v404_v30 }
 0x334   :  { %v406_v31 = vpop.f32.mrf.mxu3 }
 0x335   :  { %v407_v32 = vadd.f32 %v594_v28, %v406_v31 }
 0x337   :  { %410 = vst.msk [vmem:[%s964_s12 + $0x8] sm:$0xff] %vm149_vm0, %v407_v32 }
 0x33c   :  { %v448_v34 = vpop.f32.mrf.mxu3 }
 0x33d   :  { %v449_v35 = vadd.f32 %v595_v33, %v448_v34 }
 0x33f   :  { %v454_v36 = vmax.f32 %v449_v35, 0.0 }
 0x341   :  { %581 = vmatmul.msk.f32.vlgmr.msrb.gmra.mxu2 %vm149_vm0, %v454_v36 }
 0x344   :  { %v451_v37 = vpop.f32.mrf.mxu3 }
 0x345   :  { %v452_v38 = vadd.f32 %v595_v33, %v451_v37 }
 0x347   :  { %v455_v39 = vmax.f32 %v452_v38, 0.0 }
 0x349   :  { %582 = vmatmul.msk.f32.gmra.mxu2 %vm149_vm0, %v455_v39 }
 0x3c4   :  { %v499_v41 = vpop.f32.mrf.mxu2 }
 0x3c5   :  { %v500_v42 = vadd.f32 %v596_v40, %v499_v41 }
 0x3c7   :  { %v505_v43 = vsub.f32 %v880_v7, %v500_v42 }
 0x3c9   :  { %v507_v44 = vmul.f32 %v505_v43, %v505_v43 }
 0x3cb   :  { %v509_v45 = vsel %vm149_vm0, %v507_v44, 0.0 }
 0x3cc   :  { %v502_v46 = vpop.f32.mrf.mxu2  ;;  %510 = vadd.xlane.f32.xlu2 %v509_v45 }
 0x3cd   :  { %v503_v47 = vadd.f32 %v596_v40, %v502_v46 }
 0x3cf   :  { %v506_v48 = vsub.f32 %v884_v8, %v503_v47 }
 0x3d1   :  { %v508_v49 = vmul.f32 %v506_v48, %v506_v48 }
 0x3d3   :  { %v512_v50 = vsel %vm149_vm0, %v508_v49, 0.0 }
 0x3d4   :  { %513 = vadd.xlane.f32.xlu2 %v512_v50 }
 0x43f   :  { %v511_v51 = vpop.xlane.xlu2 %510 }
 0x440   :  { %603 = vrsqrt.f32 %v511_v51  ;;  %vm522_vm14 = vcmp.eq.f32.partialorder %v511_v51, inf  ;;  %v525_v8 = vand.u32 2147483648, %v511_v51  ;;  %vm524_vm0 = vcmp.eq.f32.partialorder %v511_v51, 0.0 }
 0x446   :  { %v604_v52 = vpop.eup %603 }
 0x447   :  { %v516_v53 = vmul.f32 %v604_v52, %v511_v51  ;;  %v514_v54 = vpop.xlane.xlu2 %513 }
 0x448   :  { %605 = vrsqrt.f32 %v514_v54  ;;  %vm534_vm1 = vcmp.eq.f32.partialorder %v514_v54, inf  ;;  %v537_v4 = vand.u32 2147483648, %v514_v54  ;;  %vm536_vm2 = vcmp.eq.f32.partialorder %v514_v54, 0.0 }
 0x449   :  { %v517_v55 = vmul.f32 %v604_v52, %v516_v53 }
 0x44b   :  { %v518_v7 = vmul.f32 0.5, %v517_v55 }
 0x44d   :  { %v519_v56 = vsub.f32 1.5, %v518_v7 }
 0x44e   :  { %v606_v57 = vpop.eup %605 }
 0x44f   :  { %v520_v58 = vmul.f32 %v604_v52, %v519_v56  ;;  %v528_v59 = vmul.f32 %v606_v57, %v514_v54 }
 0x451   :  { %v521_v60 = vmul.f32 %v520_v58, %v511_v51  ;;  %v529_v61 = vmul.f32 %v606_v57, %v528_v59 }
 0x453   :  { %v523_v62 = vsel %vm522_vm14, %v511_v51, %v521_v60  ;;  %v530_v63 = vmul.f32 0.5, %v529_v61 }
 0x454   :  { %v526_v0 = vsel %vm524_vm0, %v525_v8, %v523_v62 }
 0x455   :  { %540 = vst.msk [vmem:[%s965_s13] sm:$0xff] %vm539_vm15, %v526_v0  ;;  %v531_v1 = vsub.f32 1.5, %v530_v63 }
 0x457   :  { %v532_v2 = vmul.f32 %v606_v57, %v531_v1 }
 0x459   :  { %v533_v3 = vmul.f32 %v532_v2, %v514_v54 }
 0x45b   :  { %v535_v5 = vsel %vm534_vm1, %v514_v54, %v533_v3 }
 0x45c   :  { %v538_v6 = vsel %vm536_vm2, %v537_v4, %v535_v5 }
 0x45d   :  { %541 = vst.msk [vmem:[%s965_s13 + $0x8] sm:$0xff] %vm539_vm15, %v538_v6 }
 0x45e   :  { %550 = vsyncpa [#allocation3], 1 }
 0x45f   :  { %551 = vsyncpa [#allocation5], 1 }
 0x460   :  { %552 = vsyncpa [#allocation8], 1 }
 0x461   :  { %553 = vsyncpa [#allocation11], 1 }

</bundles_post_ra>
